<compile_context>
chip_gen: v5e
topology: v5e:2x2
jax: 0.10.0
libtpu: 0.0.40
codegen_flags: <defaults>
</compile_context>

<pallas_src>
import functools

import jax
import jax.numpy as jnp
from jax.experimental import pallas as pl
from jax.experimental.pallas import tpu as pltpu


def _round_up(x, m):
    return (x + m - 1) // m * m


def _attention_kernel(x_ref, wq_ref, wk_ref, wv_ref, wout_ref, o_ref, *,
                      heads, dim_head, scale, matmul_dtype):
    # x_ref block: (Bper, n, dim).  Weights (head-major, fully VMEM resident):
    #   wq/wk/wv: (heads, dim, dim_head);  wout: (heads, dim_head, dim_padded)
    b_per, n, dim = x_ref.shape
    dimp = o_ref.shape[-1]
    rows = b_per * n

    cast = lambda t: t.astype(matmul_dtype)

    # Hoist weight loads / casts (once per grid step).
    wq = cast(wq_ref[...])
    wk = cast(wk_ref[...])
    wv = cast(wv_ref[...])

    x2 = x_ref[...].reshape(rows, dim)                    # (rows, dim)
    xb = cast(jnp.broadcast_to(x2, (heads, rows, dim)))   # add head batch dim

    # Head-batched QKV projections -> (heads, rows, dim_head), f32 accumulate.
    q = jnp.einsum('hrd,hde->hre', xb, wq,
                   preferred_element_type=jnp.float32)
    k = jnp.einsum('hrd,hde->hre', xb, wk,
                   preferred_element_type=jnp.float32)
    v = jnp.einsum('hrd,hde->hre', xb, wv,
                   preferred_element_type=jnp.float32)

    # Fold (heads, Bper) into one batch axis; attention mixes only within each
    # group of n tokens.  rows = Bper*n splits on a sublane-tile boundary
    # (n = 8), so these reshapes are layout-trivial.
    g = heads * b_per
    q4 = q.reshape(g, n, dim_head)
    k4 = k.reshape(g, n, dim_head)
    v4 = v.reshape(g, n, dim_head)

    # Scaled dot-product attention; softmax over keys in f32.
    dots = jnp.einsum('gid,gjd->gij', cast(q4), cast(k4),
                      preferred_element_type=jnp.float32) * scale   # (g, n, n)
    m = jnp.max(dots, axis=-1, keepdims=True)
    p = jnp.exp(dots - m)
    denom = jnp.sum(p, axis=-1, keepdims=True)
    attn = p * pl.reciprocal(denom, approx=True)

    out = jnp.einsum('gij,gjd->gid', cast(attn), cast(v4),
                     preferred_element_type=jnp.float32)            # (g, n, d)

    # Merge heads directly into the output projection: y = sum_h out_h @ W_h.
    # Leading-axis indexing only (no lane slicing, no concatenate); heads is a
    # small static constant so the unrolled accumulate chains on the MXU.
    out_h = out.reshape(heads, rows, dim_head)
    y = jnp.zeros((rows, dimp), jnp.float32)
    for h in range(heads):
        y = y + jnp.dot(cast(out_h[h]), cast(wout_ref[h]),
                        preferred_element_type=jnp.float32)

    # dimp is a multiple of 128 -> lane-dense, unmasked stores.
    o_ref[...] = y.reshape(b_per, n, dimp).astype(o_ref.dtype)


def attention_pallas(x, w_qkv, w_out, *, heads, dim_head,
                     matmul_dtype=jnp.float32):
    """x: (b1, b2, n, dim) float32. Returns (b1, b2, n, dim)."""
    b1, b2, n, dim = x.shape
    inner = heads * dim_head
    assert w_qkv.shape == (dim, 3 * inner)
    assert w_out.shape == (inner, dim)
    scale = float(dim_head) ** -0.5

    B = b1 * b2
    x3 = x.reshape(B, n, dim)

    # Head-major weight layouts (one-time wrapper-side plumbing, outside the
    # kernel) so the kernel never transposes / lane-slices activations.
    def split_heads(w):  # (dim, inner) -> (heads, dim, dim_head)
        return jnp.transpose(w.reshape(dim, heads, dim_head), (1, 0, 2))

    wq = split_heads(w_qkv[:, 0 * inner:1 * inner])
    wk = split_heads(w_qkv[:, 1 * inner:2 * inner])
    wv = split_heads(w_qkv[:, 2 * inner:3 * inner])

    # Lane-dense output: pad the output feature dim up to a multiple of 128 by
    # zero-padding the output-projection weight; wrapper strips the padding.
    dimp = _round_up(dim, 128)
    wout = w_out.reshape(heads, dim_head, dim)
    if dimp != dim:
        wout = jnp.pad(wout, ((0, 0), (0, 0), (0, dimp - dim)))

    # Fuse the batch into 1 or 2 big grid steps (2 keeps both v7x TCs busy).
    G = 2 if (B % 2 == 0 and B >= 2) else 1
    b_per = B // G

    kernel = functools.partial(_attention_kernel, heads=heads,
                               dim_head=dim_head, scale=scale,
                               matmul_dtype=matmul_dtype)

    out = pl.pallas_call(
        kernel,
        out_shape=jax.ShapeDtypeStruct((B, n, dimp), x.dtype),
        grid_spec=pltpu.PrefetchScalarGridSpec(
            num_scalar_prefetch=0,
            grid=(G,),
            in_specs=[
                pl.BlockSpec((b_per, n, dim), lambda g: (g, 0, 0)),
                pl.BlockSpec((heads, dim, dim_head), lambda g: (0, 0, 0)),
                pl.BlockSpec((heads, dim, dim_head), lambda g: (0, 0, 0)),
                pl.BlockSpec((heads, dim, dim_head), lambda g: (0, 0, 0)),
                pl.BlockSpec((heads, dim_head, dimp), lambda g: (0, 0, 0)),
            ],
            out_specs=pl.BlockSpec((b_per, n, dimp), lambda g: (g, 0, 0)),
        ),
        compiler_params=pltpu.CompilerParams(
            dimension_semantics=("parallel",)),
    )(x3, wq, wk, wv, wout)

    return out[:, :, :dim].reshape(b1, b2, n, dim)
    # TODO(synk): for large n, add a key-tiled (online-softmax) variant and an
    # explicit vmem_limit_bytes; at NeRF-scale n the full (n, n) tile fits.


def attention_reference(x, w_qkv, w_out, *, heads, dim_head):
    """Pure-JAX reference matching the PyTorch forward pass."""
    b1, b2, n, dim = x.shape
    inner = heads * dim_head
    scale = float(dim_head) ** -0.5
    qkv = jnp.einsum('bcnd,de->bcne', x, w_qkv)
    q, k, v = jnp.split(qkv, 3, axis=-1)

    def to_heads(t):
        return jnp.transpose(t.reshape(b1, b2, n, heads, dim_head),
                             (0, 1, 3, 2, 4))

    q, k, v = map(to_heads, (q, k, v))
    dots = jnp.einsum('bchid,bchjd->bchij', q, k) * scale
    attn = jax.nn.softmax(dots, axis=-1)
    out = jnp.einsum('bchij,bchjd->bchid', attn, v)
    out = jnp.transpose(out, (0, 1, 3, 2, 4)).reshape(b1, b2, n, inner)
    return jnp.einsum('bcne,ed->bcnd', out, w_out)


if __name__ == "__main__":
    # Small shapes consistent with the module: x is (b1, b2, n, dim).
    b1, b2, n, dim = 2, 2, 8, 32
    heads, dim_head = 4, 16
    inner = heads * dim_head

    key = jax.random.PRNGKey(0)
    kx, kqkv, kout = jax.random.split(key, 3)

    x = jax.random.normal(kx, (b1, b2, n, dim), dtype=jnp.float32)
    # PyTorch Linear weight is (out, in); we store the transposed (in, out)
    # layout used for right-multiplication.
    w_qkv = (jax.random.normal(kqkv, (dim, 3 * inner), dtype=jnp.float32)
             * (1.0 / jnp.sqrt(dim)))
    w_out = (jax.random.normal(kout, (inner, dim), dtype=jnp.float32)
             * (1.0 / jnp.sqrt(inner)))

    y_ref = attention_reference(x, w_qkv, w_out, heads=heads, dim_head=dim_head)

    # The module's second forward arg `k` is shadowed/unused; omitted here.
    # f32 MXU path (default).
    y = attention_pallas(x, w_qkv, w_out, heads=heads, dim_head=dim_head)
    y = jax.block_until_ready(y)
    assert jnp.allclose(y, y_ref, atol=5e-3, rtol=5e-3), "f32 mismatch vs reference"

    # bf16 MXU operands (v6e/v7x lever), f32 accumulation + f32 softmax.
    y_bf16 = attention_pallas(x, w_qkv, w_out, heads=heads, dim_head=dim_head,
                              matmul_dtype=jnp.bfloat16)
    y_bf16 = jax.block_until_ready(y_bf16)
    assert jnp.allclose(y_bf16, y_ref, atol=5e-2, rtol=5e-2), \
        "bf16 mismatch vs reference"

    print("KERNEL_OK")
</pallas_src>

<mosaic_0001>
module attributes {stable_mosaic.version = 11 : i64} {
  func.func @_attention_kernel(%arg0: i32, %arg1: memref<2x8x32xf32, #tpu.memory_space<vmem>>, %arg2: memref<4x32x16xf32, #tpu.memory_space<vmem>>, %arg3: memref<4x32x16xf32, #tpu.memory_space<vmem>>, %arg4: memref<4x32x16xf32, #tpu.memory_space<vmem>>, %arg5: memref<4x16x128xf32, #tpu.memory_space<vmem>>, %arg6: memref<2x8x128xf32, #tpu.memory_space<vmem>>) attributes {dimension_semantics = [#tpu.dimension_semantics<parallel>], iteration_bounds = array<i64: 2>, scalar_prefetch = 0 : i64, scratch_operands = 0 : i64, tpu.core_type = #tpu.core_type<tc>, window_params = [{transform_indices = @transform_0, window_bounds = array<i64: 2, 8, 32>}, {pipeline_mode = #tpu.pipeline_mode<synchronous>, transform_indices = @transform_1, window_bounds = array<i64: 4, 32, 16>}, {pipeline_mode = #tpu.pipeline_mode<synchronous>, transform_indices = @transform_2, window_bounds = array<i64: 4, 32, 16>}, {pipeline_mode = #tpu.pipeline_mode<synchronous>, transform_indices = @transform_3, window_bounds = array<i64: 4, 32, 16>}, {pipeline_mode = #tpu.pipeline_mode<synchronous>, transform_indices = @transform_4, window_bounds = array<i64: 4, 16, 128>}, {transform_indices = @transform_5, window_bounds = array<i64: 2, 8, 128>}]} {
    %c0 = arith.constant 0 : index
    %c0_0 = arith.constant 0 : index
    %c0_1 = arith.constant 0 : index
    %0 = vector.load %arg2[%c0, %c0_0, %c0_1] : memref<4x32x16xf32, #tpu.memory_space<vmem>>, vector<4x32x16xf32>
    %c0_2 = arith.constant 0 : index
    %c0_3 = arith.constant 0 : index
    %c0_4 = arith.constant 0 : index
    %1 = vector.load %arg3[%c0_2, %c0_3, %c0_4] : memref<4x32x16xf32, #tpu.memory_space<vmem>>, vector<4x32x16xf32>
    %c0_5 = arith.constant 0 : index
    %c0_6 = arith.constant 0 : index
    %c0_7 = arith.constant 0 : index
    %2 = vector.load %arg4[%c0_5, %c0_6, %c0_7] : memref<4x32x16xf32, #tpu.memory_space<vmem>>, vector<4x32x16xf32>
    %c0_8 = arith.constant 0 : index
    %c0_9 = arith.constant 0 : index
    %c0_10 = arith.constant 0 : index
    %3 = vector.load %arg1[%c0_8, %c0_9, %c0_10] : memref<2x8x32xf32, #tpu.memory_space<vmem>>, vector<2x8x32xf32>
    %4 = vector.shape_cast %3 : vector<2x8x32xf32> to vector<16x32xf32>
    %5 = vector.shape_cast %4 : vector<16x32xf32> to vector<1x16x32xf32>
    %6 = vector.broadcast %5 : vector<1x16x32xf32> to vector<4x16x32xf32>
    "tpu.trace_start"() <{level = 10 : i32, message = "hrd,hde->hre"}> : () -> ()
    %cst = arith.constant dense<0.000000e+00> : vector<4x16x16xf32>
    %7 = tpu.matmul %6, %0, %cst {dimension_numbers = #tpu.dot_dimension_numbers<[2], [1], [1], [2], [0, 0, 0, 1, 1, 2], [0], [0]>} : vector<4x16x32xf32>, vector<4x32x16xf32>, vector<4x16x16xf32> -> vector<4x16x16xf32>
    %cst_11 = arith.constant dense<0.000000e+00> : vector<4x16x16xf32>
    %8 = tpu.matmul %6, %1, %cst_11 {dimension_numbers = #tpu.dot_dimension_numbers<[2], [1], [1], [2], [0, 0, 0, 1, 1, 2], [0], [0]>} : vector<4x16x32xf32>, vector<4x32x16xf32>, vector<4x16x16xf32> -> vector<4x16x16xf32>
    %cst_12 = arith.constant dense<0.000000e+00> : vector<4x16x16xf32>
    %9 = tpu.matmul %6, %2, %cst_12 {dimension_numbers = #tpu.dot_dimension_numbers<[2], [1], [1], [2], [0, 0, 0, 1, 1, 2], [0], [0]>} : vector<4x16x32xf32>, vector<4x32x16xf32>, vector<4x16x16xf32> -> vector<4x16x16xf32>
    "tpu.trace_stop"() : () -> ()
    %10 = vector.shape_cast %7 : vector<4x16x16xf32> to vector<8x8x16xf32>
    %11 = vector.shape_cast %8 : vector<4x16x16xf32> to vector<8x8x16xf32>
    %12 = vector.shape_cast %9 : vector<4x16x16xf32> to vector<8x8x16xf32>
    "tpu.trace_start"() <{level = 10 : i32, message = "gid,gjd->gij"}> : () -> ()
    %cst_13 = arith.constant dense<0.000000e+00> : vector<8x8x8xf32>
    %13 = tpu.matmul %10, %11, %cst_13 {dimension_numbers = #tpu.dot_dimension_numbers<[2], [2], [1], [1], [0, 0, 0, 1, 1, 1], [0], [0]>} : vector<8x8x16xf32>, vector<8x8x16xf32>, vector<8x8x8xf32> -> vector<8x8x8xf32>
    "tpu.trace_stop"() : () -> ()
    %cst_14 = arith.constant 2.500000e-01 : f32
    %14 = vector.broadcast %cst_14 : f32 to vector<8x8x8xf32>
    %15 = arith.mulf %13, %14 : vector<8x8x8xf32>
    %cst_15 = arith.constant dense<0xFF800000> : vector<8x8xf32>
    %16 = vector.multi_reduction <maximumf>, %15, %cst_15 [2] : vector<8x8x8xf32> to vector<8x8xf32>
    %17 = vector.shape_cast %16 : vector<8x8xf32> to vector<8x8x1xf32>
    %18 = vector.broadcast %17 : vector<8x8x1xf32> to vector<8x8x8xf32>
    %19 = arith.subf %15, %18 : vector<8x8x8xf32>
    %20 = math.exp %19 : vector<8x8x8xf32>
    %cst_16 = arith.constant dense<0.000000e+00> : vector<8x8xf32>
    %21 = vector.multi_reduction <add>, %20, %cst_16 [2] : vector<8x8x8xf32> to vector<8x8xf32>
    %22 = vector.shape_cast %21 : vector<8x8xf32> to vector<8x8x1xf32>
    %23 = tpu.reciprocal %22 {approx = true} : vector<8x8x1xf32> -> vector<8x8x1xf32>
    %24 = vector.broadcast %23 : vector<8x8x1xf32> to vector<8x8x8xf32>
    %25 = arith.mulf %20, %24 : vector<8x8x8xf32>
    "tpu.trace_start"() <{level = 10 : i32, message = "gij,gjd->gid"}> : () -> ()
    %cst_17 = arith.constant dense<0.000000e+00> : vector<8x8x16xf32>
    %26 = tpu.matmul %25, %12, %cst_17 {dimension_numbers = #tpu.dot_dimension_numbers<[2], [1], [1], [2], [0, 0, 0, 1, 1, 2], [0], [0]>} : vector<8x8x8xf32>, vector<8x8x16xf32>, vector<8x8x16xf32> -> vector<8x8x16xf32>
    "tpu.trace_stop"() : () -> ()
    %27 = vector.shape_cast %26 : vector<8x8x16xf32> to vector<4x16x16xf32>
    %cst_18 = arith.constant 0.000000e+00 : f32
    %28 = vector.broadcast %cst_18 : f32 to vector<16x128xf32>
    %29 = vector.extract_strided_slice %27 {offsets = [0, 0, 0], sizes = [1, 16, 16], strides = [1, 1, 1]} : vector<4x16x16xf32> to vector<1x16x16xf32>
    %30 = vector.shape_cast %29 : vector<1x16x16xf32> to vector<16x16xf32>
    %c0_19 = arith.constant 0 : index
    %c0_20 = arith.constant 0 : index
    %c0_21 = arith.constant 0 : index
    %31 = vector.load %arg5[%c0_19, %c0_20, %c0_21] : memref<4x16x128xf32, #tpu.memory_space<vmem>>, vector<1x16x128xf32>
    %32 = vector.shape_cast %31 : vector<1x16x128xf32> to vector<16x128xf32>
    %cst_22 = arith.constant dense<0.000000e+00> : vector<16x128xf32>
    %33 = tpu.matmul %30, %32, %cst_22 {dimension_numbers = #tpu.dot_dimension_numbers<[1], [0], [0], [1], [0, 0, 1, 1], [], []>} : vector<16x16xf32>, vector<16x128xf32>, vector<16x128xf32> -> vector<16x128xf32>
    %34 = arith.addf %28, %33 : vector<16x128xf32>
    %35 = vector.extract_strided_slice %27 {offsets = [1, 0, 0], sizes = [1, 16, 16], strides = [1, 1, 1]} : vector<4x16x16xf32> to vector<1x16x16xf32>
    %36 = vector.shape_cast %35 : vector<1x16x16xf32> to vector<16x16xf32>
    %c1 = arith.constant 1 : index
    %c0_23 = arith.constant 0 : index
    %c0_24 = arith.constant 0 : index
    %37 = vector.load %arg5[%c1, %c0_23, %c0_24] : memref<4x16x128xf32, #tpu.memory_space<vmem>>, vector<1x16x128xf32>
    %38 = vector.shape_cast %37 : vector<1x16x128xf32> to vector<16x128xf32>
    %cst_25 = arith.constant dense<0.000000e+00> : vector<16x128xf32>
    %39 = tpu.matmul %36, %38, %cst_25 {dimension_numbers = #tpu.dot_dimension_numbers<[1], [0], [0], [1], [0, 0, 1, 1], [], []>} : vector<16x16xf32>, vector<16x128xf32>, vector<16x128xf32> -> vector<16x128xf32>
    %40 = arith.addf %34, %39 : vector<16x128xf32>
    %41 = vector.extract_strided_slice %27 {offsets = [2, 0, 0], sizes = [1, 16, 16], strides = [1, 1, 1]} : vector<4x16x16xf32> to vector<1x16x16xf32>
    %42 = vector.shape_cast %41 : vector<1x16x16xf32> to vector<16x16xf32>
    %c2 = arith.constant 2 : index
    %c0_26 = arith.constant 0 : index
    %c0_27 = arith.constant 0 : index
    %43 = vector.load %arg5[%c2, %c0_26, %c0_27] : memref<4x16x128xf32, #tpu.memory_space<vmem>>, vector<1x16x128xf32>
    %44 = vector.shape_cast %43 : vector<1x16x128xf32> to vector<16x128xf32>
    %cst_28 = arith.constant dense<0.000000e+00> : vector<16x128xf32>
    %45 = tpu.matmul %42, %44, %cst_28 {dimension_numbers = #tpu.dot_dimension_numbers<[1], [0], [0], [1], [0, 0, 1, 1], [], []>} : vector<16x16xf32>, vector<16x128xf32>, vector<16x128xf32> -> vector<16x128xf32>
    %46 = arith.addf %40, %45 : vector<16x128xf32>
    %47 = vector.extract_strided_slice %27 {offsets = [3, 0, 0], sizes = [1, 16, 16], strides = [1, 1, 1]} : vector<4x16x16xf32> to vector<1x16x16xf32>
    %48 = vector.shape_cast %47 : vector<1x16x16xf32> to vector<16x16xf32>
    %c3 = arith.constant 3 : index
    %c0_29 = arith.constant 0 : index
    %c0_30 = arith.constant 0 : index
    %49 = vector.load %arg5[%c3, %c0_29, %c0_30] : memref<4x16x128xf32, #tpu.memory_space<vmem>>, vector<1x16x128xf32>
    %50 = vector.shape_cast %49 : vector<1x16x128xf32> to vector<16x128xf32>
    %cst_31 = arith.constant dense<0.000000e+00> : vector<16x128xf32>
    %51 = tpu.matmul %48, %50, %cst_31 {dimension_numbers = #tpu.dot_dimension_numbers<[1], [0], [0], [1], [0, 0, 1, 1], [], []>} : vector<16x16xf32>, vector<16x128xf32>, vector<16x128xf32> -> vector<16x128xf32>
    %52 = arith.addf %46, %51 : vector<16x128xf32>
    %53 = vector.shape_cast %52 : vector<16x128xf32> to vector<2x8x128xf32>
    %c0_32 = arith.constant 0 : index
    %c0_33 = arith.constant 0 : index
    %c0_34 = arith.constant 0 : index
    %54 = vector.load %arg6[%c0_32, %c0_33, %c0_34] : memref<2x8x128xf32, #tpu.memory_space<vmem>>, vector<2x8x128xf32>
    tpu.vector_store %arg6[%c0_32, %c0_33, %c0_34], %53 {strides = array<i32>} : memref<2x8x128xf32, #tpu.memory_space<vmem>>, vector<2x8x128xf32>,
    return
  }
  func.func @transform_0(%arg0: i32) -> (i32, i32, i32) {
    %c0_i32 = arith.constant 0 : i32
    %c0_i32_0 = arith.constant 0 : i32
    %c0_i32_1 = arith.constant 0 : i32
    return %arg0, %c0_i32, %c0_i32_0 : i32, i32, i32
  }
  func.func @transform_1(%arg0: i32) -> (i32, i32, i32) {
    %c0_i32 = arith.constant 0 : i32
    %c0_i32_0 = arith.constant 0 : i32
    %c0_i32_1 = arith.constant 0 : i32
    %c0_i32_2 = arith.constant 0 : i32
    return %c0_i32, %c0_i32_0, %c0_i32_1 : i32, i32, i32
  }
  func.func @transform_2(%arg0: i32) -> (i32, i32, i32) {
    %c0_i32 = arith.constant 0 : i32
    %c0_i32_0 = arith.constant 0 : i32
    %c0_i32_1 = arith.constant 0 : i32
    %c0_i32_2 = arith.constant 0 : i32
    return %c0_i32, %c0_i32_0, %c0_i32_1 : i32, i32, i32
  }
  func.func @transform_3(%arg0: i32) -> (i32, i32, i32) {
    %c0_i32 = arith.constant 0 : i32
    %c0_i32_0 = arith.constant 0 : i32
    %c0_i32_1 = arith.constant 0 : i32
    %c0_i32_2 = arith.constant 0 : i32
    return %c0_i32, %c0_i32_0, %c0_i32_1 : i32, i32, i32
  }
  func.func @transform_4(%arg0: i32) -> (i32, i32, i32) {
    %c0_i32 = arith.constant 0 : i32
    %c0_i32_0 = arith.constant 0 : i32
    %c0_i32_1 = arith.constant 0 : i32
    %c0_i32_2 = arith.constant 0 : i32
    return %c0_i32, %c0_i32_0, %c0_i32_1 : i32, i32, i32
  }
  func.func @transform_5(%arg0: i32) -> (i32, i32, i32) {
    %c0_i32 = arith.constant 0 : i32
    %c0_i32_0 = arith.constant 0 : i32
    %c0_i32_1 = arith.constant 0 : i32
    return %arg0, %c0_i32, %c0_i32_0 : i32, i32, i32
  }
}

</mosaic_0001>

<bundles_post_ra>
// kernel: tpu_custom_call.1
= control target key start
LH: loop header
LB: loop body
LE: loop exit
PB: predicated region body
PF: predicated region fallthrough
CT: control target
= control target key end

     0   :  { %10 = vsyncpa [#allocation3], 0  ;;  %s1856_s0 = inlined_call_operand.vmem [shape: f32[4,8,32], index: 0, kind: input, shape index: {}]   ;;  %s1857_s1 = inlined_call_operand.vmem [shape: f32[4,32,16], index: 1, kind: input, shape index: {}]   ;;  %s1858_s2 = inlined_call_operand.vmem [shape: f32[4,32,16], index: 2, kind: input, shape index: {}]   ;;  %s1859_s3 = inlined_call_operand.vmem [shape: f32[4,32,16], index: 3, kind: input, shape index: {}]   ;;  %s1860_s4 = inlined_call_operand.vmem [shape: f32[4,16,128], index: 4, kind: input, shape index: {}]   ;;  %s1861_s5 = inlined_call_operand.hbm [shape: f32[4,8,128], index: 5, kind: output, shape index: {}]  }
   0x1   :  { %12 = vsyncpa [#allocation3 + $0x1], 0  ;;  %s1504_s18 = smov 0   ;;  %s1506_s19 = smov 0  }
   0x2   :  { %s1508_s20 = smov 0   ;;  %s1510_s21 = smov 0  }
   0x3 LB: > { %s1525_s22 = sadd.s32 4294967295, %s1470_s21   ;;  %s1260_s23 = sadd.s32 4294967294, %s1470_s21   ;;  %s1470_s21 = sphi %s1510_s21, %s1867_s21   ;;  %s1466_s20 = sphi %s1508_s20, %s1866_s20   ;;  %s1462_s19 = sphi %s1506_s19, %s1865_s19   ;;  %s1458_s18 = sphi %s1504_s18, %s1864_s18  }
   0x4   : > { %s1529_s24 = sadd.s32 1, %s1470_s21   ;;  %s135_s25 = sadd.s32 1, %s1466_s20 }
   0x5   : > { %s132_s26 = ssub.s32 %s1470_s21, %s1529_s24  ;;  %p145_p0 = scmp.ne.s32.totalorder %s1466_s20, %s1462_s19 }
   0x6   : > { %p133_p1 = scmp.eq.s32.totalorder %s132_s26, 0  ;;  %p146_p2 = scmp.eq.s32.totalorder %s1525_s22, 1 }
   0x7   : > { %p151_p3 = scmp.ne.s32.totalorder %s1462_s19, %s1458_s18  ;;  %p152_p4 = scmp.eq.s32.totalorder %s1260_s23, 1 }
   0x8   : > { %s1540_s27 = scalar_select %p133_p1, %s1466_s20, %s135_s25  }
   0x9   : > { %p1542_p5 = por %p146_p2, %p145_p0  ;;  %p1546_p6 = por %p152_p4, %p151_p3 }
   0xa   : > { %p1263_p7 = scmp.ge.s32.totalorder %s1470_s21, 1  ;;  %p191_p8 = scmp.lt.s32.totalorder %s1470_s21, 3 }
   0xc   : > { %p192_p9 = pnand %p1263_p7, %p191_p8 }
   0xd   : > { %s1265_s11 = sshll.u32 (!%p192_p9), %s1525_s22, 1  ;;  %s216_s12 = sand.u32 (!%p192_p9), 1, %s1462_s19  }
   0xe   : > { %195 = sbr.rel (%p192_p9) target bundleno = 857 (0x359), region = 40  ;;  %p220_p10 = scmp.lt.s32.totalorder (!%p192_p9), %s1265_s11, 3 }
   0xf   : > { %s1264_s13 = sshll.u32 (!%p192_p9), %s216_s12, 4  ;;  %s1334_s14 = sshll.u32 (!%p192_p9), %s1525_s22, 4 }
  0x10   : > { %s1183_s22 = scalar_lea.sflag (!%p192_p9), [#allocation3], %s216_s12  ;;  %s1428_s8 = scalar_lea.hbm (!%p192_p9), %s1861_s5, 32 }
  0x13   : > { %v229_v0 = vld [vmem:[%s1857_s1 + $0x18] sm:$0xff]  ;;  %v228_v2 = vld [vmem:[%s1857_s1 + $0x10] sm:$0xff]  ;;  %v227_v5 = vld [vmem:[%s1857_s1 + $0x8] sm:$0xff]  ;;  %s1869_s11 = smov (!%p220_p10, %s1265_s11), 3  ;;  %vm276_vm0 = vcmask 261120   ;;  %vm559_vm1 = vcmask 130048  }
  0x14   : > { %v233_v1 = vld [vmem:[%s1857_s1 + $0x38] sm:$0xff]  ;;  %295 = vmatpush.msra.mxu0 %v229_v0  ;;  %v232_v3 = vld [vmem:[%s1857_s1 + $0x30] sm:$0xff]  ;;  %v231_v6 = vld [vmem:[%s1857_s1 + $0x28] sm:$0xff]  ;;  %s1266_s15 = sshll.u32 %s1869_s11, 3  ;;  %vm776_vm2 = vcmask 64512  }
  0x15   : > { %318 = vmatpush.msra.mxu1 %v233_v1  ;;  %v241_v4 = vld [vmem:[%s1857_s1 + $0x78] sm:$0xff]  ;;  %v240_v7 = vld [vmem:[%s1857_s1 + $0x70] sm:$0xff]  ;;  %v239_v8 = vld [vmem:[%s1857_s1 + $0x68] sm:$0xff]  ;;  %s223_s23 = scalar_lea.vmem %s1856_s0, %s1266_s15  ;;  %s218_s15 = scalar_lea.vmem [#allocation2], %s1264_s13 }
  0x16   : > { %364 = vmatpush.msra.mxu3 %v241_v4  ;;  %296 = vmatpush.msra.mxu0 %v228_v2  ;;  %v226_v9 = vld [vmem:[%s1857_s1] sm:$0xff]  ;;  %v237_v11 = vld [vmem:[%s1857_s1 + $0x58] sm:$0xff]  ;;  %v236_v13 = vld [vmem:[%s1857_s1 + $0x50] sm:$0xff]  ;;  %s1195_s25 = sshll.u32 %s218_s15, 4  ;;  %s1196_s25 = int_to_ptr.vmem [resolvable:$true] %s1195_s25 }
  0x17   : > { %319 = vmatpush.msra.mxu1 %v232_v3  ;;  %v230_v10 = vld [vmem:[%s1857_s1 + $0x20] sm:$0xff]  ;;  %341 = vmatpush.msra.mxu2 %v237_v11  ;;  %v245_v15 = vld [vmem:[%s1858_s2 + $0x18] sm:$0xff]  ;;  %v235_v16 = vld [vmem:[%s1857_s1 + $0x48] sm:$0xff] }
  0x18   : > { %365 = vmatpush.msra.mxu3 %v240_v7  ;;  %297 = vmatpush.msra.mxu0 %v227_v5  ;;  %v238_v12 = vld [vmem:[%s1857_s1 + $0x60] sm:$0xff]  ;;  %v249_v17 = vld [vmem:[%s1858_s2 + $0x38] sm:$0xff]  ;;  %v244_v18 = vld [vmem:[%s1858_s2 + $0x10] sm:$0xff] }
  0x19   : > { %320 = vmatpush.msra.mxu1 %v231_v6  ;;  %v1598_v14 = vld [vmem:[%s223_s23] sm:$0xff]  ;;  %342 = vmatpush.msra.mxu2 %v236_v13  ;;  %v257_v19 = vld [vmem:[%s1858_s2 + $0x78] sm:$0xff]  ;;  %v248_v21 = vld [vmem:[%s1858_s2 + $0x30] sm:$0xff] }
  0x1a   : > { %366 = vmatpush.msra.mxu3 %v239_v8  ;;  %298 = vmatpush.msra.mxu0 %v226_v9  ;;  %v234_v20 = vld [vmem:[%s1857_s1 + $0x40] sm:$0xff]  ;;  %v243_v22 = vld [vmem:[%s1858_s2 + $0x8] sm:$0xff]  ;;  %v256_v24 = vld [vmem:[%s1858_s2 + $0x70] sm:$0xff] }
  0x1b   : > { %321 = vmatpush.msra.mxu1 %v230_v10  ;;  %1267 = vmatmul.msk.f32.vlgmr.msra.gmra.mxu0 %vm276_vm0, %v1598_v14  ;;  %v247_v23 = vld [vmem:[%s1858_s2 + $0x28] sm:$0xff]  ;;  %v242_v26 = vld [vmem:[%s1858_s2] sm:$0xff]  ;;  %v253_v28 = vld [vmem:[%s1858_s2 + $0x58] sm:$0xff] }
  0x1c   : > { %1269 = vmatmul.msk.f32.vlgmr.msra.gmra.mxu1 %vm276_vm0, %v1598_v14  ;;  %367 = vmatpush.msra.mxu3 %v238_v12  ;;  %v1636_v25 = vld [vmem:[%s223_s23 + $0x8] sm:$0xff]  ;;  %v246_v27 = vld [vmem:[%s1858_s2 + $0x20] sm:$0xff]  ;;  %v261_v30 = vld [vmem:[%s1859_s3 + $0x18] sm:$0xff]  ;;  %s1194_s23 = scalar_lea.hbm %s1861_s5, %s1334_s14 }
  0x1d   : > { %1273 = vmatmul.msk.f32.vlgmr.msra.gmra.mxu3 %vm276_vm0, %v1598_v14  ;;  %387 = vmatpush.msrb.mxu0 %v245_v15  ;;  %v255_v29 = vld [vmem:[%s1858_s2 + $0x68] sm:$0xff]  ;;  %v252_v31 = vld [vmem:[%s1858_s2 + $0x50] sm:$0xff]  ;;  %v254_v32 = vld [vmem:[%s1858_s2 + $0x60] sm:$0xff]  ;;  %s1197_s26 = sshll.u32 %s1194_s23, 4  ;;  %s1198_s26 = int_to_ptr.hbm [resolvable:$true] %s1197_s26 }
  0x1e   : > { %343 = vmatpush.msra.mxu2 %v235_v16  ;;  %410 = vmatpush.msrb.mxu1 %v249_v17  ;;  %v260_v33 = vld [vmem:[%s1859_s3 + $0x10] sm:$0xff]  ;;  %v251_v34 = vld [vmem:[%s1858_s2 + $0x48] sm:$0xff]  ;;  %v250_v35 = vld [vmem:[%s1858_s2 + $0x40] sm:$0xff]  ;;  %s1422_s30 = sshra.s32 %s1198_s26, 4  ;;  %s1423_s30 = int_to_ptr.hbm [resolvable:$true] %s1422_s30 }
  0x1f   : > { %388 = vmatpush.msrb.mxu0 %v244_v18  ;;  %456 = vmatpush.msrb.mxu3 %v257_v19  ;;  %v269_v36 = vld [vmem:[%s1859_s3 + $0x58] sm:$0xff]  ;;  %v268_v37 = vld [vmem:[%s1859_s3 + $0x50] sm:$0xff]  ;;  %v259_v38 = vld [vmem:[%s1859_s3 + $0x8] sm:$0xff]  ;;  %s1424_s6 = scalar_lea.hbm %s1423_s30, 16  ;;  %p1429_p0 = scmp.lt.s32.totalorder %s1423_s30, %s1861_s5 }
  0x20   : > { %344 = vmatpush.msra.mxu2 %v234_v20  ;;  %411 = vmatpush.msrb.mxu1 %v248_v21  ;;  %v267_v39 = vld [vmem:[%s1859_s3 + $0x48] sm:$0xff]  ;;  %v258_v40 = vld [vmem:[%s1859_s3] sm:$0xff]  ;;  %v265_v42 = vld [vmem:[%s1859_s3 + $0x38] sm:$0xff]  ;;  %p1425_p11 = scmp.ne.s32.totalorder %s1423_s30, %s1424_s6  ;;  %p1430_p1 = scmp.lt.s32.totalorder %s1428_s8, %s1424_s6 }
  0x21   : > { %1271 = vmatmul.msk.f32.vlgmr.msra.gmra.mxu2 %vm276_vm0, %v1598_v14  ;;  %389 = vmatpush.msrb.mxu0 %v243_v22  ;;  %v266_v41 = vld [vmem:[%s1859_s3 + $0x40] sm:$0xff]  ;;  %v273_v43 = vld [vmem:[%s1859_s3 + $0x78] sm:$0xff]  ;;  %v264_v44 = vld [vmem:[%s1859_s3 + $0x30] sm:$0xff] }
  0x22   : > { %412 = vmatpush.msrb.mxu1 %v247_v23  ;;  %457 = vmatpush.msrb.mxu3 %v256_v24  ;;  %v272_v45 = vld [vmem:[%s1859_s3 + $0x70] sm:$0xff]  ;;  %v263_v46 = vld [vmem:[%s1859_s3 + $0x28] sm:$0xff]  ;;  %v262_v48 = vld [vmem:[%s1859_s3 + $0x20] sm:$0xff]  ;;  %p1426_p12 = pnand %p1425_p11, %p1542_p5  ;;  %p1431_p2 = por %p1430_p1, %p1429_p0 }
  0x23   : > { %1268 = vmatmul.msk.f32.gmra.mxu0 %vm276_vm0, %v1636_v25  ;;  %433 = vmatpush.msrb.mxu2 %v253_v28  ;;  %v271_v47 = vld [vmem:[%s1859_s3 + $0x68] sm:$0xff]  ;;  %v270_v49 = vld [vmem:[%s1859_s3 + $0x60] sm:$0xff] }
  0x24   : > { %1270 = vmatmul.msk.f32.gmra.mxu1 %vm276_vm0, %v1636_v25  ;;  %390 = vmatpush.msrb.mxu0 %v242_v26  ;;  %p1427_p13 = pneg %p1426_p12 }
  0x25   : > { %413 = vmatpush.msrb.mxu1 %v246_v27  ;;  %1274 = vmatmul.msk.f32.gmra.mxu3 %vm276_vm0, %v1636_v25 }
  0x26   : > { %458 = vmatpush.msrb.mxu3 %v255_v29  ;;  %479 = vmatpush.msra.mxu0 %v261_v30  ;;  %p1432_p3 = pnand %p1431_p2, %p1427_p13 }
  0x27   : > { %434 = vmatpush.msrb.mxu2 %v252_v31  ;;  %502 = vmatpush.msra.mxu1 %v265_v42 }
  0x28   : > { %459 = vmatpush.msrb.mxu3 %v254_v32  ;;  %480 = vmatpush.msra.mxu0 %v260_v33 }
  0x29   : > { %1272 = vmatmul.msk.f32.gmra.mxu2 %vm276_vm0, %v1636_v25  ;;  %503 = vmatpush.msra.mxu1 %v264_v44 }
  0x2a   : > { %435 = vmatpush.msrb.mxu2 %v251_v34  ;;  %481 = vmatpush.msra.mxu0 %v259_v38 }
  0x2b   : > { %1275 = vmatmul.msk.f32.vlgmr.msrb.gmra.mxu0 %vm276_vm0, %v1598_v14  ;;  %548 = vmatpush.msra.mxu3 %v273_v43 }
  0x2c   : > { %1277 = vmatmul.msk.f32.vlgmr.msrb.gmra.mxu1 %vm276_vm0, %v1598_v14  ;;  %436 = vmatpush.msrb.mxu2 %v250_v35 }
  0x2d   : > { %1281 = vmatmul.msk.f32.vlgmr.msrb.gmra.mxu3 %vm276_vm0, %v1598_v14  ;;  %482 = vmatpush.msra.mxu0 %v258_v40 }
  0x2e   : > { %525 = vmatpush.msra.mxu2 %v269_v36  ;;  %549 = vmatpush.msra.mxu3 %v272_v45 }
  0x2f   : > { %504 = vmatpush.msra.mxu1 %v263_v46 }
  0x30   : > { %526 = vmatpush.msra.mxu2 %v268_v37  ;;  %550 = vmatpush.msra.mxu3 %v271_v47 }
  0x31   : > { %1279 = vmatmul.msk.f32.vlgmr.msrb.gmra.mxu2 %vm276_vm0, %v1598_v14  ;;  %505 = vmatpush.msra.mxu1 %v262_v48 }
  0x32   : > { %527 = vmatpush.msra.mxu2 %v267_v39  ;;  %551 = vmatpush.msra.mxu3 %v270_v49 }
  0x33   : > { %1276 = vmatmul.msk.f32.gmra.mxu0 %vm276_vm0, %v1636_v25 }
  0x34   : > { %1278 = vmatmul.msk.f32.gmra.mxu1 %vm276_vm0, %v1636_v25  ;;  %528 = vmatpush.msra.mxu2 %v266_v41 }
  0x35   : > { %1282 = vmatmul.msk.f32.gmra.mxu3 %vm276_vm0, %v1636_v25 }
  0x39   : > { %1280 = vmatmul.msk.f32.gmra.mxu2 %vm276_vm0, %v1636_v25 }
  0x3b   : > { %1283 = vmatmul.msk.f32.vlgmr.msra.gmra.mxu0 %vm276_vm0, %v1598_v14 }
  0x3c   : > { %1285 = vmatmul.msk.f32.vlgmr.msra.gmra.mxu1 %vm276_vm0, %v1598_v14 }
  0x3d   : > { %1289 = vmatmul.msk.f32.vlgmr.msra.gmra.mxu3 %vm276_vm0, %v1598_v14 }
  0x41   : > { %1287 = vmatmul.msk.f32.vlgmr.msra.gmra.mxu2 %vm276_vm0, %v1598_v14 }
  0x43   : > { %1284 = vmatmul.msk.f32.gmra.mxu0 %vm276_vm0, %v1636_v25 }
  0x44   : > { %1286 = vmatmul.msk.f32.gmra.mxu1 %vm276_vm0, %v1636_v25 }
  0x45   : > { %1290 = vmatmul.msk.f32.gmra.mxu3 %vm276_vm0, %v1636_v25 }
  0x49   : > { %1288 = vmatmul.msk.f32.gmra.mxu2 %vm276_vm0, %v1636_v25 }
  0x98   : > { %v300_v50 = vpop.f32.mrf.mxu0 }
  0x99   : > { %v323_v51 = vpop.f32.mrf.mxu1 }
  0xa0   : > { %v303_v52 = vpop.f32.mrf.mxu0  ;;  %v369_v54 = vpop.f32.mrf.mxu3 }
  0xa1   : > { %v326_v53 = vpop.f32.mrf.mxu1 }
  0xa4   : > { %v346_v55 = vpop.f32.mrf.mxu2 }
  0xa8   : > { %v392_v56 = vpop.f32.mrf.mxu0  ;;  %v372_v58 = vpop.f32.mrf.mxu3 }
  0xa9   : > { %v415_v57 = vpop.f32.mrf.mxu1  ;;  %1291 = vmatpush.xpose.msk.msrb.mxu0 %vm559_vm1, %v392_v56 }
  0xaa   : > { %1295 = vmatpush.xpose.msk.msrb.mxu2 %vm559_vm1, %v415_v57 }
  0xac   : > { %1292 = vmatmul.msk.f32.vlgmr.msrb.gmra.mxu0 %vm559_vm1, %v300_v50  ;;  %v349_v59 = vpop.f32.mrf.mxu2 }
  0xad   : > { %1296 = vmatmul.msk.f32.vlgmr.msrb.gmra.mxu2 %vm559_vm1, %v323_v51 }
  0xb0   : > { %v395_v60 = vpop.f32.mrf.mxu0  ;;  %v461_v62 = vpop.f32.mrf.mxu3 }
  0xb1   : > { %v418_v61 = vpop.f32.mrf.mxu1  ;;  %1293 = vmatpush.xpose.msk.msrb.mxu1 %vm559_vm1, %v395_v60  ;;  %1303 = vmatpush.xpose.msk.msra.mxu2 %vm559_vm1, %v461_v62 }
  0xb2   : > { %1297 = vmatpush.xpose.msk.msrb.mxu3 %vm559_vm1, %v418_v61 }
  0xb4   : > { %1294 = vmatmul.msk.f32.vlgmr.msrb.gmra.mxu1 %vm559_vm1, %v303_v52  ;;  %v438_v63 = vpop.f32.mrf.mxu2 }
  0xb5   : > { %1298 = vmatmul.msk.f32.vlgmr.msrb.gmra.mxu3 %vm559_vm1, %v326_v53  ;;  %1304 = vmatmul.msk.f32.vlgmr.msra.gmra.mxu2 %vm559_vm1, %v369_v54 }
  0xb6   : > { %1299 = vmatpush.xpose.msk.msra.mxu0 %vm559_vm1, %v438_v63 }
  0xb8   : > { %v464_v0 = vpop.f32.mrf.mxu3  ;;  %v484_v2 = vpop.f32.mrf.mxu0 }
  0xb9   : > { %1300 = vmatmul.msk.f32.vlgmr.msra.gmra.mxu0 %vm559_vm1, %v346_v55  ;;  %1305 = vmatpush.xpose.msk.msra.mxu3 %vm559_vm1, %v464_v0  ;;  %v507_v5 = vpop.f32.mrf.mxu1 }
  0xba   : > { %883 = vmatpush.msrb.mxu0 %v484_v2  ;;  %929 = vmatpush.msrb.mxu2 %v507_v5 }
  0xbc   : > { %v441_v1 = vpop.f32.mrf.mxu2 }
  0xbd   : > { %1306 = vmatmul.msk.f32.vlgmr.msra.gmra.mxu3 %vm559_vm1, %v372_v58  ;;  %1301 = vmatpush.xpose.msk.msra.mxu1 %vm559_vm1, %v441_v1 }
  0xc0   : > { %1302 = vmatmul.msk.f32.vlgmr.msra.gmra.mxu1 %vm559_vm1, %v349_v59  ;;  %v487_v4 = vpop.f32.mrf.mxu0  ;;  %v553_v7 = vpop.f32.mrf.mxu3 }
  0xc1   : > { %906 = vmatpush.msrb.mxu1 %v487_v4  ;;  %v510_v8 = vpop.f32.mrf.mxu1  ;;  %1021 = vmatpush.msra.mxu2 %v553_v7 }
  0xc2   : > { %952 = vmatpush.msrb.mxu3 %v510_v8 }
  0xc4   : > { %v530_v3 = vpop.f32.mrf.mxu2 }
  0xc5   : > { %975 = vmatpush.msra.mxu0 %v530_v3 }
  0xc8   : > { %v556_v9 = vpop.f32.mrf.mxu3 }
  0xc9   : > { %1044 = vmatpush.msra.mxu3 %v556_v9 }
  0xcc   : > { %v533_v6 = vpop.f32.mrf.mxu2 }
  0xcd   : > { %998 = vmatpush.msra.mxu1 %v533_v6 }
 0x129   : > { %v583_v10 = vpop.f32.mrf.mxu0 }
 0x12a   : > { %v768_v18 = vmul.f32 0.25, %v583_v10 }
 0x12c   : > { %v777_v23 = vsel %vm776_vm2, %v768_v18, -inf }
 0x130   : > { %v635_v11 = vpop.f32.mrf.mxu2 }
 0x131   : > { %v770_v12 = vmul.f32 0.25, %v635_v11  ;;  %v609_v13 = vpop.f32.mrf.mxu1 }
 0x132   : > { %v769_v14 = vmul.f32 0.25, %v609_v13 }
 0x133   : > { %v783_v15 = vsel %vm776_vm2, %v770_v12, -inf }
 0x134   : > { %784 = vmax.xlane.f32.xlu0 %v783_v15  ;;  %v780_v16 = vsel %vm776_vm2, %v769_v14, -inf }
 0x135   : > { %781 = vmax.xlane.f32.xlu2 %v780_v16 }
 0x136   : > { %v687_v17 = vpop.f32.mrf.mxu0 }
 0x137   : > { %v772_v21 = vmul.f32 0.25, %v687_v17 }
 0x138   : > { %v661_v19 = vpop.f32.mrf.mxu3  ;;  %v739_v24 = vpop.f32.mrf.mxu2 }
 0x139   : > { %v771_v20 = vmul.f32 0.25, %v661_v19  ;;  %v789_v25 = vsel %vm776_vm2, %v772_v21, -inf  ;;  %v774_v26 = vmul.f32 0.25, %v739_v24 }
 0x13b   : > { %v786_v22 = vsel %vm776_vm2, %v771_v20, -inf  ;;  %v795_v29 = vsel %vm776_vm2, %v774_v26, -inf }
 0x13c   : > { %787 = vmax.xlane.f32.xlu1 %v786_v22  ;;  %778 = vmax.xlane.f32.xlu0 %v777_v23  ;;  %v1316_v22 = vld [vmem:[%s1860_s4 + $0x18] sm:$0xff] }
 0x13d   : > { %790 = vmax.xlane.f32.xlu2 %v789_v25  ;;  %v713_v30 = vpop.f32.mrf.mxu1 }
 0x13e   : > { %v773_v32 = vmul.f32 0.25, %v713_v30 }
 0x140   : > { %v765_v27 = vpop.f32.mrf.mxu3  ;;  %v792_v33 = vsel %vm776_vm2, %v773_v32, -inf }
 0x141   : > { %v775_v28 = vmul.f32 0.25, %v765_v27 }
 0x143   : > { %v798_v31 = vsel %vm776_vm2, %v775_v28, -inf }
 0x144   : > { %796 = vmax.xlane.f32.xlu1 %v795_v29  ;;  %799 = vmax.xlane.f32.xlu0 %v798_v31 }
 0x14c   : > { %793 = vmax.xlane.f32.xlu1 %v792_v33 }
 0x1a7   : > { %v785_v34 = vpop.xlane.xlu0 %784 }
 0x1a8   : > { %v803_v35 = vsub.f32 %v770_v12, %v785_v34  ;;  %v782_v36 = vpop.xlane.xlu2 %781 }
 0x1a9   : > { %v802_v47 = vsub.f32 %v769_v14, %v782_v36  ;;  %v1050_v36 = vld [vmem:[%s1860_s4 + $0x8] sm:$0xff] }
 0x1aa   : > { %v813_v37 = vmul.f32 1.442695, %v803_v35  ;;  %v1315_v35 = vld [vmem:[%s1860_s4 + $0x10] sm:$0xff] }
 0x1ab   : > { %v811_v50 = vmul.f32 1.442695, %v802_v47 }
 0x1ac   : > { %1376 = vpow2.f32 %v813_v37  ;;  %v1049_v37 = vld [vmem:[%s1860_s4] sm:$0xff] }
 0x1af   : > { %v788_v38 = vpop.xlane.xlu1 %787  ;;  %v779_v39 = vpop.xlane.xlu0 %778 }
 0x1b0   : > { %v804_v40 = vsub.f32 %v771_v20, %v788_v38  ;;  %v801_v41 = vsub.f32 %v768_v18, %v779_v39  ;;  %v791_v42 = vpop.xlane.xlu2 %790  ;;  %v1322_v38 = vld [vmem:[%s1860_s4 + $0x28] sm:$0xff]  ;;  %v1321_v39 = vld [vmem:[%s1860_s4 + $0x20] sm:$0xff] }
 0x1b1   : > { %v805_v46 = vsub.f32 %v772_v21, %v791_v42 }
 0x1b2   : > { %v1377_v43 = vpop.eup %1376  ;;  %v815_v44 = vmul.f32 1.442695, %v804_v40  ;;  %v809_v45 = vmul.f32 1.442695, %v801_v41  ;;  %v1326_v40 = vld [vmem:[%s1860_s4 + $0x38] sm:$0xff]  ;;  %v1325_v41 = vld [vmem:[%s1860_s4 + $0x30] sm:$0xff] }
 0x1b3   : > { %v831_v48 = vsel %vm776_vm2, %v1377_v43, 0.0  ;;  %v817_v49 = vmul.f32 1.442695, %v805_v46 }
 0x1b4   : > { %1378 = vpow2.f32 %v815_v44  ;;  %832 = vadd.xlane.f32.xlu2 %v831_v48 }
 0x1b5   : > { %1380 = vpow2.f32 %v809_v45 }
 0x1b6   : > { %1382 = vpow2.f32 %v817_v49 }
 0x1b7   : > { %v797_v51 = vpop.xlane.xlu1 %796  ;;  %v800_v53 = vpop.xlane.xlu0 %799  ;;  %1384 = vpow2.f32 %v811_v50 }
 0x1b8   : > { %v807_v52 = vsub.f32 %v774_v26, %v797_v51  ;;  %v808_v56 = vsub.f32 %v775_v28, %v800_v53 }
 0x1ba   : > { %v1379_v54 = vpop.eup %1378  ;;  %v821_v55 = vmul.f32 1.442695, %v807_v52  ;;  %v823_v60 = vmul.f32 1.442695, %v808_v56 }
 0x1bb   : > { %v1381_v57 = vpop.eup %1380  ;;  %v834_v58 = vsel %vm776_vm2, %v1379_v54, 0.0 }
 0x1bc   : > { %1386 = vpow2.f32 %v821_v55  ;;  %835 = vadd.xlane.f32.xlu1 %v834_v58  ;;  %v825_v59 = vsel %vm776_vm2, %v1381_v57, 0.0  ;;  %v1383_v62 = vpop.eup %1382 }
 0x1bd   : > { %826 = vadd.xlane.f32.xlu0 %v825_v59  ;;  %v1385_v0 = vpop.eup %1384  ;;  %1388 = vpow2.f32 %v823_v60  ;;  %v837_v4 = vsel %vm776_vm2, %v1383_v62, 0.0 }
 0x1be   : > { %v828_v5 = vsel %vm776_vm2, %v1385_v0, 0.0 }
 0x1bf   : > { %v794_v61 = vpop.xlane.xlu1 %793 }
 0x1c0   : > { %v806_v63 = vsub.f32 %v773_v32, %v794_v61 }
 0x1c2   : > { %v1387_v1 = vpop.eup %1386  ;;  %v819_v2 = vmul.f32 1.442695, %v806_v63 }
 0x1c3   : > { %v843_v3 = vsel %vm776_vm2, %v1387_v1, 0.0  ;;  %v1389_v6 = vpop.eup %1388 }
 0x1c4   : > { %1390 = vpow2.f32 %v819_v2  ;;  %844 = vadd.xlane.f32.xlu2 %v843_v3  ;;  %838 = vadd.xlane.f32.xlu1 %v837_v4  ;;  %v846_v9 = vsel %vm776_vm2, %v1389_v6, 0.0 }
 0x1c5   : > { %829 = vadd.xlane.f32.xlu0 %v828_v5 }
 0x1ca   : > { %v1391_v7 = vpop.eup %1390 }
 0x1cb   : > { %v840_v8 = vsel %vm776_vm2, %v1391_v7, 0.0 }
 0x1cc   : > { %847 = vadd.xlane.f32.xlu2 %v846_v9 }
 0x1cd   : > { %841 = vadd.xlane.f32.xlu0 %v840_v8 }
 0x227   : > { %v833_v10 = vpop.xlane.xlu2 %832 }
 0x228   : > { %1392 = vrcp.f32 %v833_v10 }
 0x22e   : > { %v1393_v11 = vpop.eup %1392 }
 0x22f   : > { %v859_v12 = vmul.f32 %v1393_v11, %v1377_v43  ;;  %v836_v13 = vpop.xlane.xlu1 %835 }
 0x230   : > { %1394 = vrcp.f32 %v836_v13  ;;  %v827_v14 = vpop.xlane.xlu0 %826 }
 0x231   : > { %1396 = vrcp.f32 %v827_v14  ;;  %1309 = vmatmul.msk.f32.vlgmr.msrb.gmra.mxu2 %vm776_vm2, %v859_v12 }
 0x232   : > { %1135 = vmatpush.msrb.mxu2 %v1322_v38 }
 0x234   : > { %1136 = vmatpush.msrb.mxu2 %v1321_v39 }
 0x236   : > { %v1395_v15 = vpop.eup %1394 }
 0x237   : > { %v1397_v16 = vpop.eup %1396  ;;  %v860_v17 = vmul.f32 %v1395_v15, %v1379_v54  ;;  %v839_v18 = vpop.xlane.xlu1 %838 }
 0x238   : > { %v845_v19 = vpop.xlane.xlu2 %844  ;;  %v857_v20 = vmul.f32 %v1397_v16, %v1381_v57  ;;  %v830_v21 = vpop.xlane.xlu0 %829  ;;  %1398 = vrcp.f32 %v839_v18 }
 0x239   : > { %1400 = vrcp.f32 %v830_v21  ;;  %1310 = vmatmul.msk.f32.vlgmr.msrb.gmra.mxu3 %vm776_vm2, %v860_v17 }
 0x23a   : > { %1402 = vrcp.f32 %v845_v19  ;;  %1307 = vmatmul.msk.f32.vlgmr.msrb.gmra.mxu0 %vm776_vm2, %v857_v20  ;;  %1169 = vmatpush.msrb.mxu3 %v1326_v40 }
 0x23b   : > { %1074 = vmatpush.msrb.mxu0 %v1316_v22 }
 0x23c   : > { %1170 = vmatpush.msrb.mxu3 %v1325_v41 }
 0x23d   : > { %1075 = vmatpush.msrb.mxu0 %v1315_v35 }
 0x23e   : > { %v1399_v23 = vpop.eup %1398 }
 0x23f   : > { %v1401_v24 = vpop.eup %1400  ;;  %v861_v25 = vmul.f32 %v1399_v23, %v1383_v62 }
 0x240   : > { %v848_v26 = vpop.xlane.xlu2 %847  ;;  %v1403_v27 = vpop.eup %1402  ;;  %v858_v28 = vmul.f32 %v1401_v24, %v1385_v0 }
 0x241   : > { %v842_v29 = vpop.xlane.xlu0 %841  ;;  %1404 = vrcp.f32 %v848_v26  ;;  %v863_v30 = vmul.f32 %v1403_v27, %v1387_v1 }
 0x242   : > { %1406 = vrcp.f32 %v842_v29  ;;  %1308 = vmatmul.msk.f32.vlgmr.msrb.gmra.mxu1 %vm776_vm2, %v858_v28  ;;  %1311 = vmatmul.msk.f32.vlgmr.msra.gmra.mxu0 %vm776_vm2, %v861_v25 }
 0x243   : > { %1313 = vmatmul.msk.f32.vlgmr.msra.gmra.mxu2 %vm776_vm2, %v863_v30  ;;  %1103 = vmatpush.msrb.mxu1 %v1050_v36 }
 0x245   : > { %1104 = vmatpush.msrb.mxu1 %v1049_v37 }
 0x247   : > { %v1405_v31 = vpop.eup %1404 }
 0x248   : > { %v1407_v32 = vpop.eup %1406  ;;  %v864_v33 = vmul.f32 %v1405_v31, %v1389_v6 }
 0x249   : > { %v862_v34 = vmul.f32 %v1407_v32, %v1391_v7 }
 0x24a   : > { %1314 = vmatmul.msk.f32.vlgmr.msra.gmra.mxu3 %vm776_vm2, %v864_v33 }
 0x24b   : > { %1312 = vmatmul.msk.f32.vlgmr.msra.gmra.mxu1 %vm776_vm2, %v862_v34 }
 0x2b4   : > { %v931_v42 = vpop.f32.mrf.mxu2 }
 0x2b5   : > { %1317 = vmatmul.msk.f32.vlgmr.msrb.gmra.mxu0 %vm559_vm1, %v931_v42 }
 0x2b7   : > { %v885_v43 = vpop.f32.mrf.mxu0 }
 0x2b8   : > { %1319 = vmatmul.msk.f32.vlgmr.msrb.gmra.mxu1 %vm559_vm1, %v885_v43 }
 0x2bc   : > { %v954_v44 = vpop.f32.mrf.mxu3 }
 0x2bd   : > { %1318 = vmatmul.msk.f32.gmra.mxu0 %vm559_vm1, %v954_v44 }
 0x2bf   : > { %v908_v45 = vpop.f32.mrf.mxu1  ;;  %v977_v46 = vpop.f32.mrf.mxu0 }
 0x2c0   : > { %1320 = vmatmul.msk.f32.gmra.mxu1 %vm559_vm1, %v908_v45  ;;  %1323 = vmatmul.msk.f32.vlgmr.msrb.gmra.mxu2 %vm559_vm1, %v977_v46 }
 0x2c6   : > { %v1023_v47 = vpop.f32.mrf.mxu2 }
 0x2c7   : > { %1327 = vmatmul.msk.f32.vlgmr.msrb.gmra.mxu3 %vm559_vm1, %v1023_v47 }
 0x2c8   : > { %v1000_v48 = vpop.f32.mrf.mxu1 }
 0x2c9   : > { %1324 = vmatmul.msk.f32.gmra.mxu2 %vm559_vm1, %v1000_v48 }
 0x2cd   : > { %v1046_v49 = vpop.f32.mrf.mxu3 }
 0x2cf   : > { %1328 = vmatmul.msk.f32.gmra.mxu3 %vm559_vm1, %v1046_v49 }
 0x332   : > { %v1077_v51 = vpop.f32.mrf.mxu0 }
 0x335   : > { %v1106_v50 = vpop.f32.mrf.mxu1 }
 0x336   : > { %v1107_v53 = vadd.f32 %v1106_v50, %v1077_v51 }
 0x33a   : > { %v1080_v58 = vpop.f32.mrf.mxu0 }
 0x33d   : > { %v1109_v57 = vpop.f32.mrf.mxu1 }
 0x33e   : > { %v1110_v60 = vadd.f32 %v1109_v57, %v1080_v58 }
 0x343   : > { %v1138_v52 = vpop.f32.mrf.mxu2 }
 0x344   : > { %v1144_v54 = vadd.f32 %v1138_v52, %v1107_v53 }
 0x34a   : > { %v1172_v55 = vpop.f32.mrf.mxu3 }
 0x34b   : > { %v1178_v56 = vadd.f32 %v1172_v55, %v1144_v54 }
 0x34c   : > { %v1141_v59 = vpop.f32.mrf.mxu2 }
 0x34d   : > { %1180 = vst [vmem:[%s218_s15] sm:$0xff] %v1178_v56  ;;  %v1145_v61 = vadd.f32 %v1141_v59, %v1110_v60 }
 0x352   : > { %v1175_v62 = vpop.f32.mrf.mxu3 }
 0x353   : > { %v1179_v63 = vadd.f32 %v1175_v62, %v1145_v61 }
 0x355   : > { %1181 = vst [vmem:[%s218_s15 + $0x8] sm:$0xff] %v1179_v63 }
 0x356   : > { %1435 = shalt.err (!%p1432_p3)
}
 0x357   : > { %s1472_s12 = smov 128   ;;  %s1473_s13 = smov 8  }
 0x358   : > { %1335 = dma.vmem_to_hbm [thread:$0]  (%p1542_p5), %s1196_s25, 256, %s1198_s26, %s1183_s22, %s1472_s12, %s1472_s12, %s1473_s13  }
 0x359 PF: > { %p1341_p4 = scmp.ge.s32.totalorder %s1470_s21, 2  ;;  %s1212_s14 = sand.u32 1, %s1458_s18  }
 0x35a   : > { %s1213_s15 = scalar_lea.sflag [#allocation3], %s1212_s14 }
 0x35b   : > { %p1338_p7 = pnand %p1341_p4, %p1546_p6 }
 0x35d   : > { %p1339_p8 = pneg %p1338_p7 }
 0x35f   : > { %1453 = dma.done.wait (%p1339_p8), %s1213_s15, 256  }
 0x360   : > { %1455 = vsyncadd (%p1339_p8), %s1213_s15, 4294967040  ;;  %p15_p9 = scmp.ge.s32.totalorder %s1529_s24, 4   ;;  %s1864_s18 = smov %s1462_s19 }
 0x361   : > { %s1865_s19 = smov %s1466_s20  ;;  %s1866_s20 = smov %s1540_s27 }
 0x362   : > { %s1867_s21 = smov %s1529_s24  ;;  %17 = sbr.rel (!%p15_p9) target bundleno = 3 (0x3), region = 78 }
 0x367   :  { %1219 = vsyncpa [#allocation3], 1 }
 0x368   :  { %1221 = vsyncpa [#allocation3 + $0x1], 1 }

</bundles_post_ra>
